<compile_context>
chip_gen: v6e
topology: v6e:2x2x1
jax: 0.10.0
libtpu: 0.0.40
codegen_flags: <defaults>
</compile_context>

<pallas_src>
import functools

import jax
import jax.numpy as jnp
from jax.experimental import pallas as pl
from jax.experimental.pallas import tpu as pltpu

# Conservative per-call VMEM budget for variant selection (v7x: 64 MiB phys).
_VMEM_BUDGET = 26 << 20


def _round_up(x, m):
    return (x + m - 1) // m * m


def _pad2(a, rows, cols):
    a = a if a.ndim == 2 else a.reshape(1, -1)
    return jnp.pad(a, ((0, rows - a.shape[0]), (0, cols - a.shape[1])))


def _pick_tm(n_p):
    """Row tile: <= 512 and keep >= 2 row tiles when possible (v7x megacore)."""
    for cand in (512, 256, 128):
        if n_p % cand == 0 and n_p // cand >= 2:
            return cand
    return min(n_p, 128)


def _pick_tk(dim_p, cap=2048):
    """Largest power-of-two tile <= cap that divides dim_p (dim_p % 128 == 0)."""
    for cand in (2048, 1024, 512, 256, 128):
        if cand <= cap and dim_p % cand == 0:
            return cand
    return 128


def _vmem_limit(need_bytes):
    # Estimated need + slack, clamped to [16 MiB, 40 MiB] (v7x-safe).
    return int(min(max(need_bytes * 5 // 4 + (4 << 20), 16 << 20), 40 << 20))


def _apply_epilogue(z, epilogue, valid_cols):
    if epilogue == "relu":
        return jnp.maximum(z, 0.0)
    # log_softmax over the first `valid_cols` lanes only (padding masked out).
    cols = jax.lax.broadcasted_iota(jnp.int32, z.shape, 1)
    zm = jnp.where(cols < valid_cols, z, -jnp.inf)
    m = jnp.max(zm, axis=1, keepdims=True)
    s = zm - m
    lse = jnp.log(jnp.sum(jnp.exp(s), axis=1, keepdims=True))
    return s - lse


# ---------------------------------------------------------------------------
# Kernel 1: support = x @ W
# ---------------------------------------------------------------------------
def _matmul_full_kernel(x_ref, w_ref, o_ref):
    o_ref[...] = jnp.dot(x_ref[...], w_ref[...],
                         preferred_element_type=jnp.float32).astype(o_ref.dtype)


def _matmul_tiled_kernel(x_ref, w_ref, o_ref, acc_ref):
    @pl.when(pl.program_id(1) == 0)
    def _():
        acc_ref[...] = jnp.zeros_like(acc_ref)

    acc_ref[...] += jnp.dot(x_ref[...], w_ref[...],
                            preferred_element_type=jnp.float32)

    @pl.when(pl.program_id(1) == pl.num_programs(1) - 1)
    def _():
        o_ref[...] = acc_ref[...].astype(o_ref.dtype)


def _matmul(x, w, *, tm, out_dtype):
    M, K = x.shape
    N = w.shape[1]
    out_bytes = jnp.dtype(out_dtype).itemsize
    cost = pl.CostEstimate(
        flops=2 * M * K * N, transcendentals=0,
        bytes_accessed=(x.size * x.dtype.itemsize + w.size * w.dtype.itemsize
                        + M * N * out_bytes))

    # Preferred: weight resident in VMEM, no reduction grid axis.
    full_need = 2 * tm * K * 2 + 2 * K * N * 2 + 2 * tm * N * out_bytes
    if full_need <= _VMEM_BUDGET:
        return pl.pallas_call(
            _matmul_full_kernel,
            out_shape=jax.ShapeDtypeStruct((M, N), out_dtype),
            grid_spec=pltpu.PrefetchScalarGridSpec(
                num_scalar_prefetch=0,
                grid=(M // tm,),
                in_specs=[
                    pl.BlockSpec((tm, K), lambda i: (i, 0)),
                    pl.BlockSpec((K, N), lambda i: (0, 0)),  # resident weight
                ],
                out_specs=pl.BlockSpec((tm, N), lambda i: (i, 0)),
            ),
            compiler_params=pltpu.CompilerParams(
                dimension_semantics=("parallel",),
                vmem_limit_bytes=_vmem_limit(full_need),
            ),
            cost_estimate=cost,
        )(x, w)

    # Fallback for very large feature dims: tile the reduction axis.
    tk = _pick_tk(K)
    need = (2 * tm * tk * 2 + 2 * tk * N * 2 + tm * N * 4
            + 2 * tm * N * out_bytes)
    return pl.pallas_call(
        _matmul_tiled_kernel,
        out_shape=jax.ShapeDtypeStruct((M, N), out_dtype),
        grid_spec=pltpu.PrefetchScalarGridSpec(
            num_scalar_prefetch=0,
            grid=(M // tm, K // tk),
            in_specs=[
                pl.BlockSpec((tm, tk), lambda i, k: (i, k)),
                pl.BlockSpec((tk, N), lambda i, k: (k, 0)),
            ],
            out_specs=pl.BlockSpec((tm, N), lambda i, k: (i, 0)),
            scratch_shapes=[pltpu.VMEM((tm, N), jnp.float32)],
        ),
        compiler_params=pltpu.CompilerParams(
            dimension_semantics=("parallel", "arbitrary"),
            vmem_limit_bytes=_vmem_limit(need),
        ),
        cost_estimate=cost,
    )(x, w)


# ---------------------------------------------------------------------------
# Kernel 2: out = epilogue(adj @ support + bias)
# ---------------------------------------------------------------------------
def _aggregate_full_kernel(adj_ref, sup_ref, b_ref, o_ref, *,
                           epilogue, valid_cols):
    z = jnp.dot(adj_ref[...], sup_ref[...],
                preferred_element_type=jnp.float32) + b_ref[...]
    o_ref[...] = _apply_epilogue(z, epilogue, valid_cols).astype(o_ref.dtype)


def _aggregate_tiled_kernel(adj_ref, sup_ref, b_ref, o_ref, acc_ref, *,
                            epilogue, valid_cols, tk, support_resident):
    k = pl.program_id(1)

    @pl.when(k == 0)
    def _():
        acc_ref[...] = jnp.zeros_like(acc_ref)

    if support_resident:
        off = pl.multiple_of(k * tk, tk)
        sup = sup_ref[pl.ds(off, tk), :]
    else:
        sup = sup_ref[...]
    acc_ref[...] += jnp.dot(adj_ref[...], sup,
                            preferred_element_type=jnp.float32)

    @pl.when(k == pl.num_programs(1) - 1)
    def _():
        z = acc_ref[...] + b_ref[...]
        o_ref[...] = _apply_epilogue(z, epilogue, valid_cols).astype(o_ref.dtype)


def _graph_conv_aggregate(adj, support, bias, *, tm, epilogue, valid_cols,
                          out_dtype):
    M, K = adj.shape          # K == padded node count
    F = support.shape[1]
    out_bytes = jnp.dtype(out_dtype).itemsize
    cost = pl.CostEstimate(
        flops=2 * M * K * F,
        transcendentals=M * F if epilogue == "log_softmax" else 0,
        bytes_accessed=(adj.size * adj.dtype.itemsize
                        + support.size * support.dtype.itemsize
                        + bias.size * bias.dtype.itemsize + M * F * out_bytes))

    # Variant 1: full adj row panel + resident support, no reduction axis.
    full_need = 2 * tm * K * 2 + 2 * K * F * 2 + 2 * tm * F * out_bytes + 4 * F
    if full_need <= _VMEM_BUDGET:
        kernel = functools.partial(_aggregate_full_kernel, epilogue=epilogue,
                                   valid_cols=valid_cols)
        return pl.pallas_call(
            kernel,
            out_shape=jax.ShapeDtypeStruct((M, F), out_dtype),
            grid_spec=pltpu.PrefetchScalarGridSpec(
                num_scalar_prefetch=0,
                grid=(M // tm,),
                in_specs=[
                    pl.BlockSpec((tm, K), lambda i: (i, 0)),
                    pl.BlockSpec((K, F), lambda i: (0, 0)),  # resident support
                    pl.BlockSpec((1, F), lambda i: (0, 0)),
                ],
                out_specs=pl.BlockSpec((tm, F), lambda i: (i, 0)),
            ),
            compiler_params=pltpu.CompilerParams(
                dimension_semantics=("parallel",),
                vmem_limit_bytes=_vmem_limit(full_need),
            ),
            cost_estimate=cost,
        )(adj, support, bias)

    # Variant 2: big decoupled adj tiles over a reduction axis; keep support
    # resident in VMEM when it fits (no per-row-tile re-streaming).
    tk = _pick_tk(K)
    resident_need = (2 * tm * tk * 2 + 2 * K * F * 2 + tm * F * 4
                     + 2 * tm * F * out_bytes + 4 * F)
    support_resident = resident_need <= _VMEM_BUDGET
    if support_resident:
        sup_spec = pl.BlockSpec((K, F), lambda i, k: (0, 0))
        need = resident_need
    else:
        sup_spec = pl.BlockSpec((tk, F), lambda i, k: (k, 0))
        need = (2 * tm * tk * 2 + 2 * tk * F * 2 + tm * F * 4
                + 2 * tm * F * out_bytes + 4 * F)

    kernel = functools.partial(_aggregate_tiled_kernel, epilogue=epilogue,
                               valid_cols=valid_cols, tk=tk,
                               support_resident=support_resident)
    return pl.pallas_call(
        kernel,
        out_shape=jax.ShapeDtypeStruct((M, F), out_dtype),
        grid_spec=pltpu.PrefetchScalarGridSpec(
            num_scalar_prefetch=0,
            grid=(M // tm, K // tk),
            in_specs=[
                pl.BlockSpec((tm, tk), lambda i, k: (i, k)),
                sup_spec,
                pl.BlockSpec((1, F), lambda i, k: (0, 0)),
            ],
            out_specs=pl.BlockSpec((tm, F), lambda i, k: (i, 0)),
            scratch_shapes=[pltpu.VMEM((tm, F), jnp.float32)],
        ),
        compiler_params=pltpu.CompilerParams(
            dimension_semantics=("parallel", "arbitrary"),
            vmem_limit_bytes=_vmem_limit(need),
        ),
        cost_estimate=cost,
    )(adj, support, bias)


# ---------------------------------------------------------------------------
# Full GCN forward
# ---------------------------------------------------------------------------
def gcn_forward(x, adj, w1, b1, w2, b2):
    N, nfeat = x.shape
    nhid = w1.shape[1]
    nclass = w2.shape[1]

    nfeat_p = _round_up(nfeat, 128)
    nhid_p = _round_up(nhid, 128)
    nclass_p = _round_up(nclass, 128)

    N_p = _round_up(N, 128)
    tm = _pick_tm(N_p)          # tm divides N_p by construction

    # Pad to lane-dense shapes and cast to bf16 (f32 accumulation inside).
    x_p = _pad2(x, N_p, nfeat_p).astype(jnp.bfloat16)
    adj_p = _pad2(adj, N_p, N_p).astype(jnp.bfloat16)
    w1_p = _pad2(w1, nfeat_p, nhid_p).astype(jnp.bfloat16)
    w2_p = _pad2(w2, nhid_p, nclass_p).astype(jnp.bfloat16)
    b1_p = _pad2(b1, 1, nhid_p).astype(jnp.float32)
    b2_p = _pad2(b2, 1, nclass_p).astype(jnp.float32)

    # --- layer 1: h = relu(adj @ (x @ W1) + b1) ---
    support1 = _matmul(x_p, w1_p, tm=tm, out_dtype=jnp.bfloat16)
    h = _graph_conv_aggregate(adj_p, support1, b1_p, tm=tm, epilogue="relu",
                              valid_cols=nhid_p, out_dtype=jnp.bfloat16)

    # dropout (training=False) -> identity
    # TODO(synk): np.savetxt('../data/top.emb', h) host file I/O omitted.

    # --- layer 2: log_softmax(adj @ (h @ W2) + b2, dim=1) ---
    support2 = _matmul(h, w2_p, tm=tm, out_dtype=jnp.bfloat16)
    z = _graph_conv_aggregate(adj_p, support2, b2_p, tm=tm,
                              epilogue="log_softmax", valid_cols=nclass,
                              out_dtype=jnp.float32)

    return z[:N, :nclass]


def init_gcn_params(key, nfeat, nhid, nclass):
    """Mirror GraphConvolution.reset_parameters: uniform(-stdv, stdv),
    stdv = 1/sqrt(out_features)."""
    k1, k2, k3, k4 = jax.random.split(key, 4)
    stdv1 = 1.0 / jnp.sqrt(jnp.float32(nhid))
    stdv2 = 1.0 / jnp.sqrt(jnp.float32(nclass))
    w1 = jax.random.uniform(k1, (nfeat, nhid), jnp.float32, -stdv1, stdv1)
    b1 = jax.random.uniform(k2, (1, nhid), jnp.float32, -stdv1, stdv1)
    w2 = jax.random.uniform(k3, (nhid, nclass), jnp.float32, -stdv2, stdv2)
    b2 = jax.random.uniform(k4, (1, nclass), jnp.float32, -stdv2, stdv2)
    return w1, b1, w2, b2


def _reference_forward(x, adj, w1, b1, w2, b2):
    h = jnp.maximum(adj @ (x @ w1) + b1, 0.0)
    z = adj @ (h @ w2) + b2
    m = jnp.max(z, axis=1, keepdims=True)
    s = z - m
    return s - jnp.log(jnp.sum(jnp.exp(s), axis=1, keepdims=True))


if __name__ == "__main__":
    key = jax.random.PRNGKey(0)
    kx, kadj, kp = jax.random.split(key, 3)

    # small synthetic graph: 8 nodes, 16 input features, 32 hidden, 8 classes
    N, nfeat, nhid, nclass = 8, 16, 32, 8

    x = jax.random.normal(kx, (N, nfeat), jnp.float32)

    # symmetric normalized adjacency with self loops (synthetic)
    a = jax.random.uniform(kadj, (N, N), jnp.float32)
    a = (a > 0.5).astype(jnp.float32)
    a = jnp.maximum(a, a.T) + jnp.eye(N, dtype=jnp.float32)
    deg = jnp.sum(a, axis=1, keepdims=True)
    adj = a / deg

    w1, b1, w2, b2 = init_gcn_params(kp, nfeat, nhid, nclass)

    out = gcn_forward(x, adj, w1, b1, w2, b2)
    jax.block_until_ready(out)

    assert out.shape == (N, nclass)

    # log_softmax rows should sum (in prob space) to ~1
    row_prob_sums = jnp.sum(jnp.exp(out), axis=1)
    assert bool(jnp.all(jnp.abs(row_prob_sums - 1.0) < 1e-3))

    # match the f32 reference (loose tolerance: bf16 inputs, f32 accumulation)
    ref = _reference_forward(x, adj, w1, b1, w2, b2)
    assert bool(jnp.max(jnp.abs(out - ref)) < 0.1)

    print("KERNEL_OK")
</pallas_src>

<mosaic_0001>
module attributes {stable_mosaic.version = 11 : i64} {
  func.func @_matmul_full_kernel(%arg0: i32, %arg1: memref<128x128xbf16, #tpu.memory_space<vmem>>, %arg2: memref<128x128xbf16, #tpu.memory_space<vmem>>, %arg3: memref<128x128xbf16, #tpu.memory_space<vmem>>) attributes {dimension_semantics = [#tpu.dimension_semantics<parallel>], iteration_bounds = array<i64: 1>, scalar_prefetch = 0 : i64, scratch_operands = 0 : i64, tpu.core_type = #tpu.core_type<tc>, window_params = [{transform_indices = @transform_0, window_bounds = array<i64: 128, 128>}, {pipeline_mode = #tpu.pipeline_mode<synchronous>, transform_indices = @transform_1, window_bounds = array<i64: 128, 128>}, {transform_indices = @transform_2, window_bounds = array<i64: 128, 128>}]} {
    %c0 = arith.constant 0 : index
    %c0_0 = arith.constant 0 : index
    %0 = vector.load %arg1[%c0, %c0_0] : memref<128x128xbf16, #tpu.memory_space<vmem>>, vector<128x128xbf16>
    %c0_1 = arith.constant 0 : index
    %c0_2 = arith.constant 0 : index
    %1 = vector.load %arg2[%c0_1, %c0_2] : memref<128x128xbf16, #tpu.memory_space<vmem>>, vector<128x128xbf16>
    %cst = arith.constant dense<0.000000e+00> : vector<128x128xf32>
    %2 = tpu.matmul %0, %1, %cst {dimension_numbers = #tpu.dot_dimension_numbers<[1], [0], [0], [1], [0, 0, 1, 1], [], []>} : vector<128x128xbf16>, vector<128x128xbf16>, vector<128x128xf32> -> vector<128x128xf32>
    %3 = arith.truncf %2 : vector<128x128xf32> to vector<128x128xbf16>
    %c0_3 = arith.constant 0 : index
    %c0_4 = arith.constant 0 : index
    %4 = vector.load %arg3[%c0_3, %c0_4] : memref<128x128xbf16, #tpu.memory_space<vmem>>, vector<128x128xbf16>
    tpu.vector_store %arg3[%c0_3, %c0_4], %3 {strides = array<i32>} : memref<128x128xbf16, #tpu.memory_space<vmem>>, vector<128x128xbf16>,
    return
  }
  func.func @transform_0(%arg0: i32) -> (i32, i32) {
    %c0_i32 = arith.constant 0 : i32
    %c0_i32_0 = arith.constant 0 : i32
    return %arg0, %c0_i32 : i32, i32
  }
  func.func @transform_1(%arg0: i32) -> (i32, i32) {
    %c0_i32 = arith.constant 0 : i32
    %c0_i32_0 = arith.constant 0 : i32
    %c0_i32_1 = arith.constant 0 : i32
    return %c0_i32, %c0_i32_0 : i32, i32
  }
  func.func @transform_2(%arg0: i32) -> (i32, i32) {
    %c0_i32 = arith.constant 0 : i32
    %c0_i32_0 = arith.constant 0 : i32
    return %arg0, %c0_i32 : i32, i32
  }
}

</mosaic_0001>

<bundles_post_ra>
// kernel: tpu_custom_call.1
= control target key start
LH: loop header
LB: loop body
LE: loop exit
PB: predicated region body
PF: predicated region fallthrough
CT: control target
= control target key end

     0   :  { %7 = vsyncpa [#allocation3], 0  ;;  %s648_s0 = inlined_call_operand.hbm [shape: bf16[128,128], index: 0, kind: input, shape index: {}]   ;;  %s649_s1 = inlined_call_operand.hbm [shape: bf16[128,128], index: 1, kind: input, shape index: {}]   ;;  %s650_s2 = inlined_call_operand.hbm [shape: bf16[128,128], index: 2, kind: output, shape index: {}]  }
   0x1   :  { %8 = vsyncpa [#allocation6], 0 }
   0x2   :  { %9 = vsyncpa [#allocation4], 0  ;;  %s610_s9 = smov [#allocation2]  }
   0x3   :  { %s15_s10 = sshll.u32 %s610_s9, 4  ;;  %s16_s10 = int_to_ptr.vmem [resolvable:$true] %s15_s10 }
   0x4   :  { %s552_s11 = scalar_lea.vmem %s16_s10, 1024  ;;  %p557_p1 = scmp.lt.s32.totalorder %s16_s10, %s16_s10 }
   0x5   :  { %p553_p0 = scmp.ne.s32.totalorder %s16_s10, %s552_s11  ;;  %p558_p2 = scmp.lt.s32.totalorder %s552_s11, %s552_s11 }
   0x7   :  { %p559_p3 = por %p558_p2, %p557_p1 }
   0x9   :  { %p560_p4 = pnand %p559_p3, %p553_p0 }
   0xb   :  { %563 = shalt.err (!%p560_p4)
}
   0xc   :  { %s611_s12 = smov 64   ;;  %s612_s13 = smov 4  }
   0xd   :  { %21 = dma.hbm_to_vmem [thread:$0]  %s648_s0, 1024, %s16_s10, [#allocation3], %s611_s12, %s611_s12, %s612_s13  }
   0xe   :  { %s613_s16 = smov [#allocation5]  }
   0xf   :  { %s27_s17 = sshll.u32 %s613_s16, 4  ;;  %s28_s17 = int_to_ptr.vmem [resolvable:$true] %s27_s17 }
  0x10   :  { %s572_s18 = scalar_lea.vmem %s28_s17, 1024  ;;  %p577_p6 = scmp.lt.s32.totalorder %s28_s17, %s28_s17 }
  0x11   :  { %p573_p5 = scmp.ne.s32.totalorder %s28_s17, %s572_s18  ;;  %p578_p7 = scmp.lt.s32.totalorder %s572_s18, %s572_s18 }
  0x13   :  { %p579_p8 = por %p578_p7, %p577_p6 }
  0x15   :  { %p580_p9 = pnand %p579_p8, %p573_p5 }
  0x17   :  { %583 = shalt.err (!%p580_p9)
}
  0x18   :  { %33 = dma.hbm_to_vmem [thread:$0]  %s649_s1, 1024, %s28_s17, [#allocation6], %s611_s12, %s611_s12, %s612_s13  }
  0x19   :  { %604 = dma.done.wait [#allocation3], 1024  }
  0x1a   :  { %605 = vsyncadd [#allocation3], 4294966272 }
  0x1b   :  { %606 = dma.done.wait [#allocation6], 1024  }
  0x1c   :  { %607 = vsyncadd [#allocation6], 4294966272  ;;  %v528_v0 = vld [vmem:[#allocation5 + $0x38] sm:$0xff]   ;;  %v529_v1 = vld [vmem:[#allocation5 + $0x30] sm:$0xff]   ;;  %s614_s0 = smov [#allocation7]  }
  0x1d   :  { %475 = vmatprep.subr.bf16.mxu0 %v528_v0  ;;  %507 = vmatprep.subr.bf16.mxu1 %v528_v0  ;;  %v530_v2 = vld [vmem:[#allocation5 + $0x28] sm:$0xff]   ;;  %v531_v3 = vld [vmem:[#allocation5 + $0x20] sm:$0xff]   ;;  %v532_v6 = vld [vmem:[#allocation5 + $0x18] sm:$0xff]   ;;  %s351_s1 = sshll.u32 %s614_s0, 4  ;;  %s352_s1 = int_to_ptr.vmem [resolvable:$true] %s351_s1 }
  0x1e   :  { %476 = vmatpush3.bf16.msra.mxu0 %v528_v0  ;;  %515 = vmatpush3.bf16.msra.mxu1 %v528_v0  ;;  %v536_v4 = vld [vmem:[#allocation2] sm:$0xff]   ;;  %v533_v7 = vld [vmem:[#allocation5 + $0x10] sm:$0xff]   ;;  %v534_v8 = vld [vmem:[#allocation5 + $0x8] sm:$0xff]   ;;  %s584_s21 = scalar_lea.vmem %s352_s1, 1024  ;;  %p589_p11 = scmp.lt.s32.totalorder %s352_s1, %s352_s1 }
  0x1f   :  { %477 = vmatprep.subr.bf16.mxu0 %v529_v1  ;;  %508 = vmatprep.subr.bf16.mxu1 %v529_v1  ;;  %v537_v5 = vld [vmem:[#allocation2 + $0x20] sm:$0xff]   ;;  %v538_v10 = vld [vmem:[#allocation2 + $0x8] sm:$0xff]   ;;  %v540_v12 = vld [vmem:[#allocation2 + $0x10] sm:$0xff]   ;;  %p585_p10 = scmp.ne.s32.totalorder %s352_s1, %s584_s21  ;;  %p590_p12 = scmp.lt.s32.totalorder %s584_s21, %s584_s21 }
  0x20   :  { %491 = vmatprep.mubr.bf16.mxu0 %v536_v4  ;;  %499 = vmatprep.mubr.bf16.mxu1 %v537_v5  ;;  %v535_v9 = vld [vmem:[#allocation5] sm:$0xff]   ;;  %v539_v11 = vld [vmem:[#allocation2 + $0x28] sm:$0xff]   ;;  %v541_v13 = vld [vmem:[#allocation2 + $0x30] sm:$0xff]  }
  0x21   :  { %v542_v14 = vld [vmem:[#allocation2 + $0x18] sm:$0xff]   ;;  %p591_p13 = por %p590_p12, %p589_p11 }
  0x22   :  { %478 = vmatpush3.bf16.msra.mxu0 %v529_v1  ;;  %516 = vmatpush3.bf16.msra.mxu1 %v529_v1  ;;  %v543_v15 = vld [vmem:[#allocation2 + $0x38] sm:$0xff]  }
  0x23   :  { %479 = vmatprep.subr.bf16.mxu0 %v530_v2  ;;  %509 = vmatprep.subr.bf16.mxu1 %v530_v2  ;;  %p592_p0 = pnand %p591_p13, %p585_p10 }
  0x26   :  { %480 = vmatpush3.bf16.msra.mxu0 %v530_v2  ;;  %517 = vmatpush3.bf16.msra.mxu1 %v530_v2 }
  0x27   :  { %481 = vmatprep.subr.bf16.mxu0 %v531_v3  ;;  %510 = vmatprep.subr.bf16.mxu1 %v531_v3 }
  0x2a   :  { %482 = vmatpush3.bf16.msra.mxu0 %v531_v3  ;;  %518 = vmatpush3.bf16.msra.mxu1 %v531_v3 }
  0x2b   :  { %483 = vmatprep.subr.bf16.mxu0 %v532_v6  ;;  %511 = vmatprep.subr.bf16.mxu1 %v532_v6 }
  0x2e   :  { %484 = vmatpush3.bf16.msra.mxu0 %v532_v6  ;;  %519 = vmatpush3.bf16.msra.mxu1 %v532_v6 }
  0x2f   :  { %485 = vmatprep.subr.bf16.mxu0 %v533_v7  ;;  %512 = vmatprep.subr.bf16.mxu1 %v533_v7 }
  0x32   :  { %486 = vmatpush3.bf16.msra.mxu0 %v533_v7  ;;  %520 = vmatpush3.bf16.msra.mxu1 %v533_v7 }
  0x33   :  { %487 = vmatprep.subr.bf16.mxu0 %v534_v8  ;;  %513 = vmatprep.subr.bf16.mxu1 %v534_v8 }
  0x36   :  { %488 = vmatpush3.bf16.msra.mxu0 %v534_v8  ;;  %521 = vmatpush3.bf16.msra.mxu1 %v534_v8 }
  0x37   :  { %489 = vmatprep.subr.bf16.mxu0 %v535_v9  ;;  %514 = vmatprep.subr.bf16.mxu1 %v535_v9 }
  0x3a   :  { %490 = vmatpush3.bf16.msra.mxu0 %v535_v9  ;;  %522 = vmatpush3.bf16.msra.mxu1 %v535_v9 }
  0x3d   :  { %492 = vmatmul.mubr.bf16.vlgmr.msra.gmra.mxu0 %v538_v10  ;;  %500 = vmatmul.mubr.bf16.vlgmr.msra.gmra.mxu1 %v539_v11 }
  0x3e   :  { %495 = vmatprep.mubr.bf16.mxu0 %v540_v12  ;;  %503 = vmatprep.mubr.bf16.mxu1 %v541_v13 }
  0x45   :  { %496 = vmatmul.mubr.bf16.gmra.mxu0 %v542_v14  ;;  %504 = vmatmul.mubr.bf16.gmra.mxu1 %v543_v15 }
  0xfd   :  { %v493_v16 = vpop.f32.mrf.mxu0  ;;  %v501_v17 = vpop.f32.mrf.mxu1 }
  0xff   :  { %v203_v18 = vpop.f32.mrf.mxu0  ;;  %v235_v19 = vpop.f32.mrf.mxu1 }
 0x101   :  { %v494_v20 = vpop.f32.mrf.mxu0  ;;  %v502_v21 = vpop.f32.mrf.mxu1 }
 0x102   :  { %v420_v22 = vpack.c.bf16 %v494_v20, %v493_v16  ;;  %v440_v23 = vpack.c.bf16 %v502_v21, %v501_v17 }
 0x103   :  { %v206_v24 = vpop.f32.mrf.mxu0  ;;  %v238_v25 = vpop.f32.mrf.mxu1 }
 0x104   :  { %452 = vst [vmem:[#allocation7 + $0x8] sm:$0xff] %v420_v22   ;;  %456 = vst [vmem:[#allocation7 + $0x28] sm:$0xff] %v440_v23   ;;  %v415_v26 = vpack.c.bf16 %v206_v24, %v203_v18  ;;  %v435_v27 = vpack.c.bf16 %v238_v25, %v235_v19 }
 0x105   :  { %v497_v28 = vpop.f32.mrf.mxu0  ;;  %v505_v29 = vpop.f32.mrf.mxu1 }
 0x106   :  { %416 = vst [vmem:[#allocation7] sm:$0xff] %v415_v26   ;;  %455 = vst [vmem:[#allocation7 + $0x20] sm:$0xff] %v435_v27  }
 0x107   :  { %v219_v30 = vpop.f32.mrf.mxu0  ;;  %v251_v31 = vpop.f32.mrf.mxu1 }
 0x109   :  { %v498_v32 = vpop.f32.mrf.mxu0  ;;  %v506_v33 = vpop.f32.mrf.mxu1 }
 0x10a   :  { %v430_v34 = vpack.c.bf16 %v498_v32, %v497_v28  ;;  %v450_v35 = vpack.c.bf16 %v506_v33, %v505_v29 }
 0x10b   :  { %v222_v36 = vpop.f32.mrf.mxu0  ;;  %v254_v37 = vpop.f32.mrf.mxu1 }
 0x10c   :  { %454 = vst [vmem:[#allocation7 + $0x18] sm:$0xff] %v430_v34   ;;  %458 = vst [vmem:[#allocation7 + $0x38] sm:$0xff] %v450_v35   ;;  %v425_v38 = vpack.c.bf16 %v222_v36, %v219_v30  ;;  %v445_v39 = vpack.c.bf16 %v254_v37, %v251_v31 }
 0x10e   :  { %453 = vst [vmem:[#allocation7 + $0x10] sm:$0xff] %v425_v38   ;;  %457 = vst [vmem:[#allocation7 + $0x30] sm:$0xff] %v445_v39  }
 0x10f   :  { %595 = shalt.err (!%p592_p0)
}
 0x110   :  { %357 = dma.vmem_to_hbm [thread:$0]  %s352_s1, 1024, %s650_s2, [#allocation4], %s611_s12, %s611_s12, %s612_s13  }
 0x111   :  { %608 = dma.done.wait [#allocation4], 1024  }
 0x112   :  { %609 = vsyncadd [#allocation4], 4294966272 }
 0x113   :  { %361 = vsyncpa [#allocation3], 1 }
 0x114   :  { %362 = vsyncpa [#allocation6], 1 }
 0x115   :  { %363 = vsyncpa [#allocation4], 1 }

</bundles_post_ra>
